<compile_context>
chip_gen: v5e
topology: v5e:2x2
jax: 0.10.0
libtpu: 0.0.40
codegen_flags: <defaults>
</compile_context>

<pallas_src>
import functools

import jax
import jax.numpy as jnp
from jax.experimental import pallas as pl
from jax.experimental.pallas import tpu as pltpu


def _pseudo_ce_kernel(pred_ref, lab_ref, cw_ref, out_ref, *,
                      conf_threshold, ignore_index, hw, emit):
    """One grid step processes TP pixels of one batch element.

    pred_ref : (1, C, TP) logits (native dtype)
    lab_ref  : (1, 1, TP) i32 ground-truth labels (255 = ignore)
    cw_ref   : (C, 1)     f32 per-class weights (resident, tiny)
    out_ref  : emit == 'pixel' -> (1, 1, TP) f32 per-pixel loss
               emit == 'sum'   -> (1, 128)   f32 tile partial sum in lane 0, zeros elsewhere
    """
    pred = pred_ref[0].astype(jnp.float32)          # (C, TP)
    lab = lab_ref[0]                                 # (1, TP) int32
    cw = cw_ref[...]                                 # (C, 1)  f32
    num_classes, tp = pred.shape

    iota_c = jax.lax.broadcasted_iota(jnp.int32, pred.shape, 0)   # (C, TP)

    # shared softmax statistics
    pmax = jnp.max(pred, axis=0, keepdims=True)                               # (1, TP)
    lse = pmax + jnp.log(jnp.sum(jnp.exp(pred - pmax), axis=0, keepdims=True))

    # ---- ground-truth cross-entropy term: cw[y] * (lse - pred[y]) via fused one-hot ----
    onehot_gt = iota_c == lab                                                 # (C, TP)
    gt_term = jnp.sum(jnp.where(onehot_gt, (lse - pred) * cw, 0.0),
                      axis=0, keepdims=True)                                  # (1, TP)
    gt_loss = jnp.where(lab != ignore_index, gt_term, 0.0)

    # ---- pseudo-label cross-entropy term ----
    is_max = pred == pmax
    argmax_c = jnp.min(jnp.where(is_max, iota_c, num_classes),
                       axis=0, keepdims=True)                                 # first-max index
    cw_ps = jnp.sum(jnp.where(iota_c == argmax_c, cw, 0.0), axis=0, keepdims=True)
    take_pseudo = (pmax >= conf_threshold) & (argmax_c != ignore_index)
    ps_loss = jnp.where(take_pseudo, (lse - pmax) * cw_ps, 0.0)

    # ---- mask lanes past the true pixel count (partial edge tile; garbage reads) ----
    lane = jax.lax.broadcasted_iota(jnp.int32, (1, tp), 1)
    in_bounds = (pl.program_id(1) * tp + lane) < hw
    loss = jnp.where(in_bounds, gt_loss + ps_loss, 0.0)                       # (1, TP) f32

    if emit == "pixel":
        out_ref[0] = loss
    else:  # 'sum': lane-0 partial sum for this tile
        tile_sum = jnp.sum(loss, axis=1, keepdims=True)                       # (1, 1)
        lane128 = jax.lax.broadcasted_iota(jnp.int32, (1, 128), 1)
        out_ref[...] = jnp.where(lane128 == 0, tile_sum, 0.0).astype(jnp.float32)


def pseudo_cross_entropy_pallas(cls_score, label, class_weight=None, *,
                                reduction="mean", avg_factor=None, loss_weight=1.0,
                                conf_threshold=0.5, ignore_index=255):
    """cls_score: (N, C, H, W) logits (NCHW, native dtype). label: (N, H, W) int."""
    N, C, H, W = cls_score.shape
    HW = H * W

    # Free reshapes only -- no transpose, no padding, no dtype upcast in the wrapper.
    pred = cls_score.reshape(N, C, HW)
    lab = label.reshape(N, 1, HW).astype(jnp.int32)
    if class_weight is None:
        cw = jnp.ones((C, 1), jnp.float32)
    else:
        cw = jnp.asarray(class_weight, jnp.float32).reshape(C, 1)

    # ---- pixel-tile sizing from a conservative VMEM budget ----
    itemsize = jnp.dtype(pred.dtype).itemsize
    lane_hw = ((HW + 127) // 128) * 128
    vmem_budget = 24 * 1024 * 1024                        # well under every chip's scoped VMEM
    bytes_per_px = C * (2 * itemsize + 8 * 4) + 16        # dbl-buffered pred block + f32 temps
    tp_cap = max(128, (vmem_budget // bytes_per_px) // 128 * 128)
    TP = int(min(2048, tp_cap, lane_hw))
    num_tiles = (HW + TP - 1) // TP                       # partial edge tile masked in-kernel

    grid = (N, num_tiles)
    in_specs = [
        pl.BlockSpec((1, C, TP), lambda n, i: (n, 0, i)),
        pl.BlockSpec((1, 1, TP), lambda n, i: (n, 0, i)),
        pl.BlockSpec((C, 1), lambda n, i: (0, 0)),
    ]
    cparams = pltpu.CompilerParams(
        dimension_semantics=("parallel", "parallel"),
        vmem_limit_bytes=48 * 1024 * 1024,
    )
    kernel_kw = dict(conf_threshold=float(conf_threshold),
                     ignore_index=int(ignore_index), hw=HW)

    if reduction == "none":
        if avg_factor is not None:
            raise ValueError('avg_factor can not be used with reduction="none"')
        kernel = functools.partial(_pseudo_ce_kernel, emit="pixel", **kernel_kw)
        pix = pl.pallas_call(
            kernel,
            out_shape=jax.ShapeDtypeStruct((N, 1, HW), jnp.float32),
            grid=grid,
            in_specs=in_specs,
            out_specs=pl.BlockSpec((1, 1, TP), lambda n, i: (n, 0, i)),
            compiler_params=cparams,
        )(pred, lab, cw)
        return loss_weight * pix.reshape(N, H, W)

    if reduction not in ("mean", "sum"):
        raise ValueError(f"unknown reduction {reduction!r}")

    # 'mean' / 'sum': emit only per-tile partial sums (no per-pixel HBM write).
    G = N * num_tiles
    kernel = functools.partial(_pseudo_ce_kernel, emit="sum", **kernel_kw)
    partials = pl.pallas_call(
        kernel,
        out_shape=jax.ShapeDtypeStruct((1, G * 128), jnp.float32),
        grid=grid,
        in_specs=in_specs,
        out_specs=pl.BlockSpec((1, 128), lambda n, i: (0, n * num_tiles + i)),
        compiler_params=cparams,
    )(pred, lab, cw)
    loss_sum = jnp.sum(partials)   # only lane 0 of each 128-lane slab is non-zero

    if reduction == "sum":
        if avg_factor is not None:
            raise ValueError('avg_factor can not be used with reduction="sum"')
        return loss_weight * loss_sum
    # 'mean': plain mean over all N*H*W pixels (or sum/avg_factor, as in weight_reduce_loss)
    divisor = float(avg_factor) if avg_factor is not None else float(N * HW)
    return loss_weight * loss_sum / divisor


class PseudoCrossEntropyLoss:
    """JAX/Pallas counterpart of mmseg's PseudoCrossEntropyLoss (use_sigmoid=use_mask=False)."""

    def __init__(self, reduction="mean", class_weight=None, loss_weight=1.0,
                 confidense_threshold=0.5):
        self.reduction = reduction
        self.class_weight = class_weight
        self.loss_weight = loss_weight
        self.confidense_threshold = confidense_threshold

    def __call__(self, cls_score, label, weight=None, avg_factor=None,
                 reduction_override=None):
        assert reduction_override in (None, "none", "mean", "sum")
        # TODO(synk): elementwise `weight` re-weighting (weight_reduce_loss) not implemented;
        # the module defaults it to None.
        assert weight is None
        reduction = reduction_override if reduction_override else self.reduction
        return pseudo_cross_entropy_pallas(
            cls_score, label, self.class_weight,
            reduction=reduction, avg_factor=avg_factor, loss_weight=self.loss_weight,
            conf_threshold=self.confidense_threshold, ignore_index=255)


# ---------------------------------------------------------------------------
# Pure-JAX reference mirroring F.cross_entropy(..., reduction='none') + mmseg reduce.
# ---------------------------------------------------------------------------
def _reference_pixel(cls_score, label, class_weight, thr, ignore):
    logits = cls_score.astype(jnp.float32)
    logz = jax.scipy.special.logsumexp(logits, axis=1)                 # (N,H,W)
    C = logits.shape[1]
    cw = (jnp.ones((C,), jnp.float32) if class_weight is None
          else jnp.asarray(class_weight, jnp.float32))

    def ce(lab):
        valid = lab != ignore
        lab_c = jnp.where(valid, lab, 0)
        gathered = jnp.take_along_axis(logits, lab_c[:, None], axis=1)[:, 0]
        return jnp.where(valid, (logz - gathered) * cw[lab_c], 0.0)

    gt = ce(label)
    pmax = jnp.max(logits, axis=1)
    plab = jnp.where(pmax < thr, ignore, jnp.argmax(logits, axis=1))
    ps = ce(plab)
    return gt + ps


if __name__ == "__main__":
    key = jax.random.PRNGKey(0)
    class_weight = [0.5, 1.0, 1.5, 2.0]
    loss_fn = PseudoCrossEntropyLoss(reduction="mean", class_weight=class_weight,
                                     loss_weight=1.0, confidense_threshold=0.5)

    # ---- main test: N=2, C=4, H=W=16 (lane-aligned spatial) ----
    N, C, H, W = 2, 4, 16, 16
    k1, k2 = jax.random.split(key)
    cls_score = jax.random.normal(k1, (N, C, H, W), dtype=jnp.float32)
    label = jax.random.randint(k2, (N, H, W), 0, C).astype(jnp.int32)
    label = label.at[0, 0, :4].set(255)        # exercise ignore_index

    ref_pix = _reference_pixel(cls_score, label, class_weight, 0.5, 255)

    loss = jax.block_until_ready(loss_fn(cls_score, label))                 # 'mean'
    ref_mean = float(jnp.mean(ref_pix))
    assert abs(float(loss) - ref_mean) < 1e-4, (float(loss), ref_mean)

    loss_s = jax.block_until_ready(loss_fn(cls_score, label,
                                           reduction_override="sum"))       # 'sum'
    ref_sum = float(jnp.sum(ref_pix))
    assert abs(float(loss_s) - ref_sum) < 1e-3 * max(1.0, abs(ref_sum)), (float(loss_s), ref_sum)

    pix = jax.block_until_ready(loss_fn(cls_score, label,
                                        reduction_override="none"))         # per-pixel map
    assert pix.shape == (N, H, W)
    assert float(jnp.max(jnp.abs(pix - ref_pix))) < 1e-4

    # ---- edge-tile test: H=W=10 (HW=100 < 128) exercises the in-kernel bounds mask ----
    k3, k4 = jax.random.split(k2)
    cls2 = jax.random.normal(k3, (N, C, 10, 10), dtype=jnp.float32)
    lab2 = jax.random.randint(k4, (N, 10, 10), 0, C).astype(jnp.int32)
    lab2 = lab2.at[1, 0, :3].set(255)
    ref2 = _reference_pixel(cls2, lab2, class_weight, 0.5, 255)

    pix2 = jax.block_until_ready(loss_fn(cls2, lab2, reduction_override="none"))
    assert pix2.shape == (N, 10, 10)
    assert float(jnp.max(jnp.abs(pix2 - ref2))) < 1e-4

    mean2 = jax.block_until_ready(loss_fn(cls2, lab2))
    assert abs(float(mean2) - float(jnp.mean(ref2))) < 1e-4

    print("KERNEL_OK")
</pallas_src>

<mosaic_0001>
module attributes {stable_mosaic.version = 11 : i64} {
  func.func @_pseudo_ce_kernel(%arg0: i32, %arg1: i32, %arg2: memref<1x4x256xf32, #tpu.memory_space<vmem>>, %arg3: memref<1x1x256xi32, #tpu.memory_space<vmem>>, %arg4: memref<4x1xf32, #tpu.memory_space<vmem>>, %arg5: memref<1x128xf32, #tpu.memory_space<vmem>>) attributes {dimension_semantics = [#tpu.dimension_semantics<parallel>, #tpu.dimension_semantics<parallel>], iteration_bounds = array<i64: 2, 1>, scalar_prefetch = 0 : i64, scratch_operands = 0 : i64, tpu.core_type = #tpu.core_type<tc>, window_params = [{transform_indices = @transform_0, window_bounds = array<i64: 1, 4, 256>}, {transform_indices = @transform_1, window_bounds = array<i64: 1, 1, 256>}, {pipeline_mode = #tpu.pipeline_mode<synchronous>, transform_indices = @transform_2, window_bounds = array<i64: 4, 1>}, {transform_indices = @transform_3, window_bounds = array<i64: 1, 128>}]} {
    %c0 = arith.constant 0 : index
    %c0_0 = arith.constant 0 : index
    %c0_1 = arith.constant 0 : index
    %0 = vector.load %arg2[%c0, %c0_0, %c0_1] : memref<1x4x256xf32, #tpu.memory_space<vmem>>, vector<1x4x256xf32>
    %1 = vector.shape_cast %0 : vector<1x4x256xf32> to vector<4x256xf32>
    %c0_2 = arith.constant 0 : index
    %c0_3 = arith.constant 0 : index
    %c0_4 = arith.constant 0 : index
    %2 = vector.load %arg3[%c0_2, %c0_3, %c0_4] : memref<1x1x256xi32, #tpu.memory_space<vmem>>, vector<1x1x256xi32>
    %3 = vector.shape_cast %2 : vector<1x1x256xi32> to vector<1x256xi32>
    %c0_5 = arith.constant 0 : index
    %c0_6 = arith.constant 0 : index
    %4 = vector.load %arg4[%c0_5, %c0_6] : memref<4x1xf32, #tpu.memory_space<vmem>>, vector<4x1xf32>
    %5 = tpu.iota {dimensions = array<i32: 0>} : vector<4x256xi32>
    %cst = arith.constant dense<0xFF800000> : vector<256xf32>
    %6 = vector.multi_reduction <maximumf>, %1, %cst [0] : vector<4x256xf32> to vector<256xf32>
    %7 = vector.shape_cast %6 : vector<256xf32> to vector<1x256xf32>
    %8 = vector.broadcast %7 : vector<1x256xf32> to vector<4x256xf32>
    %9 = arith.subf %1, %8 : vector<4x256xf32>
    %10 = math.exp %9 : vector<4x256xf32>
    %cst_7 = arith.constant dense<0.000000e+00> : vector<256xf32>
    %11 = vector.multi_reduction <add>, %10, %cst_7 [0] : vector<4x256xf32> to vector<256xf32>
    %12 = vector.shape_cast %11 : vector<256xf32> to vector<1x256xf32>
    %13 = math.log %12 : vector<1x256xf32>
    %14 = arith.addf %7, %13 : vector<1x256xf32>
    %15 = vector.broadcast %3 : vector<1x256xi32> to vector<4x256xi32>
    %16 = arith.cmpi eq, %5, %15 : vector<4x256xi32>
    %17 = vector.broadcast %14 : vector<1x256xf32> to vector<4x256xf32>
    %18 = arith.subf %17, %1 : vector<4x256xf32>
    %19 = vector.broadcast %4 : vector<4x1xf32> to vector<4x256xf32>
    %20 = arith.mulf %18, %19 : vector<4x256xf32>
    %cst_8 = arith.constant 0.000000e+00 : f32
    %21 = vector.broadcast %cst_8 : f32 to vector<4x256xf32>
    %22 = arith.select %16, %20, %21 : vector<4x256xi1>, vector<4x256xf32>
    %cst_9 = arith.constant dense<0.000000e+00> : vector<256xf32>
    %23 = vector.multi_reduction <add>, %22, %cst_9 [0] : vector<4x256xf32> to vector<256xf32>
    %24 = vector.shape_cast %23 : vector<256xf32> to vector<1x256xf32>
    %c255_i32 = arith.constant 255 : i32
    %25 = vector.broadcast %c255_i32 : i32 to vector<1x256xi32>
    %26 = arith.cmpi ne, %3, %25 : vector<1x256xi32>
    %cst_10 = arith.constant 0.000000e+00 : f32
    %27 = vector.broadcast %cst_10 : f32 to vector<1x256xf32>
    %28 = arith.select %26, %24, %27 : vector<1x256xi1>, vector<1x256xf32>
    %29 = vector.broadcast %7 : vector<1x256xf32> to vector<4x256xf32>
    %30 = arith.cmpf oeq, %1, %29 : vector<4x256xf32>
    %c4_i32 = arith.constant 4 : i32
    %31 = vector.broadcast %c4_i32 : i32 to vector<4x256xi32>
    %32 = arith.select %30, %5, %31 : vector<4x256xi1>, vector<4x256xi32>
    %cst_11 = arith.constant dense<2147483647> : vector<256xi32>
    %33 = vector.multi_reduction <minsi>, %32, %cst_11 [0] : vector<4x256xi32> to vector<256xi32>
    %34 = vector.shape_cast %33 : vector<256xi32> to vector<1x256xi32>
    %35 = vector.broadcast %34 : vector<1x256xi32> to vector<4x256xi32>
    %36 = arith.cmpi eq, %5, %35 : vector<4x256xi32>
    %cst_12 = arith.constant 0.000000e+00 : f32
    %37 = vector.shape_cast %4 : vector<4x1xf32> to vector<4x1xf32>
    %38 = vector.broadcast %37 : vector<4x1xf32> to vector<4x256xf32>
    %39 = vector.broadcast %cst_12 : f32 to vector<4x256xf32>
    %40 = arith.select %36, %38, %39 : vector<4x256xi1>, vector<4x256xf32>
    %cst_13 = arith.constant dense<0.000000e+00> : vector<256xf32>
    %41 = vector.multi_reduction <add>, %40, %cst_13 [0] : vector<4x256xf32> to vector<256xf32>
    %42 = vector.shape_cast %41 : vector<256xf32> to vector<1x256xf32>
    %cst_14 = arith.constant 5.000000e-01 : f32
    %43 = vector.broadcast %cst_14 : f32 to vector<1x256xf32>
    %44 = arith.cmpf oge, %7, %43 : vector<1x256xf32>
    %c255_i32_15 = arith.constant 255 : i32
    %45 = vector.broadcast %c255_i32_15 : i32 to vector<1x256xi32>
    %46 = arith.cmpi ne, %34, %45 : vector<1x256xi32>
    %47 = arith.andi %44, %46 : vector<1x256xi1>
    %48 = arith.subf %14, %7 : vector<1x256xf32>
    %49 = arith.mulf %48, %42 : vector<1x256xf32>
    %cst_16 = arith.constant 0.000000e+00 : f32
    %50 = vector.broadcast %cst_16 : f32 to vector<1x256xf32>
    %51 = arith.select %47, %49, %50 : vector<1x256xi1>, vector<1x256xf32>
    %52 = tpu.iota {dimensions = array<i32: 1>} : vector<1x256xi32>
    %c256_i32 = arith.constant 256 : i32
    %53 = arith.muli %arg1, %c256_i32 : i32
    %54 = vector.broadcast %53 : i32 to vector<1x256xi32>
    %55 = arith.addi %54, %52 : vector<1x256xi32>
    %c256_i32_17 = arith.constant 256 : i32
    %56 = vector.broadcast %c256_i32_17 : i32 to vector<1x256xi32>
    %57 = arith.cmpi slt, %55, %56 : vector<1x256xi32>
    %58 = arith.addf %28, %51 : vector<1x256xf32>
    %cst_18 = arith.constant 0.000000e+00 : f32
    %59 = vector.broadcast %cst_18 : f32 to vector<1x256xf32>
    %60 = arith.select %57, %58, %59 : vector<1x256xi1>, vector<1x256xf32>
    %cst_19 = arith.constant dense<0.000000e+00> : vector<1xf32>
    %61 = vector.multi_reduction <add>, %60, %cst_19 [1] : vector<1x256xf32> to vector<1xf32>
    %62 = vector.shape_cast %61 : vector<1xf32> to vector<1x1xf32>
    %63 = tpu.iota {dimensions = array<i32: 1>} : vector<1x128xi32>
    %c0_i32 = arith.constant 0 : i32
    %64 = vector.broadcast %c0_i32 : i32 to vector<1x128xi32>
    %65 = arith.cmpi eq, %63, %64 : vector<1x128xi32>
    %cst_20 = arith.constant 0.000000e+00 : f32
    %66 = vector.shape_cast %62 : vector<1x1xf32> to vector<1x1xf32>
    %67 = vector.broadcast %66 : vector<1x1xf32> to vector<1x128xf32>
    %68 = vector.broadcast %cst_20 : f32 to vector<1x128xf32>
    %69 = arith.select %65, %67, %68 : vector<1x128xi1>, vector<1x128xf32>
    %c0_21 = arith.constant 0 : index
    %c0_22 = arith.constant 0 : index
    %70 = vector.load %arg5[%c0_21, %c0_22] : memref<1x128xf32, #tpu.memory_space<vmem>>, vector<1x128xf32>
    tpu.vector_store %arg5[%c0_21, %c0_22], %69 {strides = array<i32>} : memref<1x128xf32, #tpu.memory_space<vmem>>, vector<1x128xf32>,
    return
  }
  func.func @transform_0(%arg0: i32, %arg1: i32) -> (i32, i32, i32) {
    %c0_i32 = arith.constant 0 : i32
    %c0_i32_0 = arith.constant 0 : i32
    return %arg0, %c0_i32, %arg1 : i32, i32, i32
  }
  func.func @transform_1(%arg0: i32, %arg1: i32) -> (i32, i32, i32) {
    %c0_i32 = arith.constant 0 : i32
    %c0_i32_0 = arith.constant 0 : i32
    return %arg0, %c0_i32, %arg1 : i32, i32, i32
  }
  func.func @transform_2(%arg0: i32, %arg1: i32) -> (i32, i32) {
    %c0_i32 = arith.constant 0 : i32
    %c0_i32_0 = arith.constant 0 : i32
    %c0_i32_1 = arith.constant 0 : i32
    return %c0_i32, %c0_i32_0 : i32, i32
  }
  func.func @transform_3(%arg0: i32, %arg1: i32) -> (i32, i32) {
    %c1_i32 = arith.constant 1 : i32
    %0 = arith.muli %arg0, %c1_i32 : i32
    %1 = arith.addi %0, %arg1 : i32
    %c0_i32 = arith.constant 0 : i32
    %c0_i32_0 = arith.constant 0 : i32
    return %c0_i32, %1 : i32, i32
  }
}

</mosaic_0001>

<bundles_post_ra>
// kernel: tpu_custom_call.1
= control target key start
LH: loop header
LB: loop body
LE: loop exit
PB: predicated region body
PF: predicated region fallthrough
CT: control target
= control target key end

     0   :  { %8 = vsyncpa [#allocation3], 0  ;;  %s931_s0 = inlined_call_operand.hbm [shape: f32[2,4,256], index: 0, kind: input, shape index: {}]   ;;  %s932_s1 = inlined_call_operand.vmem [shape: s32[2,1,256], index: 1, kind: input, shape index: {}]   ;;  %s933_s2 = inlined_call_operand.vmem [shape: f32[4,1], index: 2, kind: input, shape index: {}]   ;;  %s934_s3 = inlined_call_operand.hbm [shape: f32[1,256], index: 3, kind: output, shape index: {}]  }
   0x1   :  { %10 = vsyncpa [#allocation3 + $0x1], 0 }
   0x2   :  { %11 = vsyncpa [#allocation4], 0 }
   0x3   :  { %13 = vsyncpa [#allocation4 + $0x1], 0  ;;  %s759_s12 = smov 0   ;;  %s761_s13 = smov 0  }
   0x4   :  { %s763_s14 = smov 0   ;;  %s765_s15 = smov 0  }
   0x5   :  { %s767_s16 = smov 0   ;;  %s769_s17 = smov 0  }
   0x6 LB: > { %s539_s18 = sadd.s32 4294967295, %s735_s17   ;;  %s540_s19 = sadd.s32 4294967294, %s735_s17   ;;  %s735_s17 = sphi %s769_s17, %s19_s17   ;;  %s731_s16 = sphi %s767_s16, %s943_s16   ;;  %s727_s15 = sphi %s765_s15, %s942_s15   ;;  %s723_s14 = sphi %s763_s14, %s941_s14   ;;  %s719_s13 = sphi %s761_s13, %s940_s13   ;;  %s715_s12 = sphi %s759_s12, %s939_s12  }
   0x7   : > { %s31_s20 = sadd.s32 1, %s731_s16  ;;  %s40_s21 = sadd.s32 1, %s723_s14 }
   0x8   : > { %p33_p0 = scmp.ge.s32.totalorder %s31_s20, 2  ;;  %p47_p1 = scmp.ne.s32.totalorder %s723_s14, %s719_s13 }
   0x9   : > { %p48_p2 = scmp.eq.s32.totalorder %s735_s17, 0  ;;  %p53_p3 = scmp.ne.s32.totalorder %s719_s13, %s715_s12 }
   0xa   : > { %s945_s20 = smov (%p33_p0, %s31_s20), 0  ;;  %p54_p5 = scmp.eq.s32.totalorder %s539_s18, 0 }
   0xb   : > { %p800_p4 = por %p48_p2, %p47_p1  ;;  %s35_s23 = ssub.s32 %s731_s16, %s945_s20 }
   0xc   : > { %p128_p6 = scmp.eq.s32.totalorder %s539_s18, 1  ;;  %p38_p7 = scmp.eq.s32.totalorder %s35_s23, 0 }
   0xd   : > { %p806_p8 = por %p54_p5, %p53_p3  ;;  %p134_p10 = scmp.eq.s32.totalorder %s540_s19, 1 }
   0xe   : > { %p810_p9 = por %p128_p6, %p47_p1  ;;  %p542_p12 = scmp.ge.s32.totalorder %s735_s17, 2 }
   0xf   : > { %s815_s26 = scalar_select %p38_p7, %s723_s14, %s40_s21  }
  0x10   : > { %p817_p11 = por %p134_p10, %p53_p3  ;;  %p564_p13 = scmp.lt.s32.totalorder %s735_s17, 2 }
  0x11   : > { %s157_s28 = sand.u32 1, %s723_s14   ;;  %s551_s30 = sshll.u32 %s731_s16, 3 }
  0x12   : > { %s543_s29 = sshll.u32 %s157_s28, 3  ;;  %s168_s6 = scalar_lea.hbm %s931_s0, %s551_s30 }
  0x13   : > { %s161_s7 = scalar_lea.vmem [#allocation2], %s543_s29  ;;  %s170_s9 = sshll.u32 %s168_s6, 4  ;;  %s171_s9 = int_to_ptr.hbm [resolvable:$true] %s170_s9 }
  0x14   : > { %s172_s8 = sshll.u32 %s161_s7, 4  ;;  %p557_p0 = pnand %p564_p13, %p800_p4  ;;  %s173_s8 = int_to_ptr.vmem [resolvable:$true] %s172_s8 }
  0x15   : > { %p546_p1 = scmp.ge.s32.totalorder %s735_s17, 1  ;;  %p189_p2 = scmp.lt.s32.totalorder %s735_s17, 3 }
  0x16   : > { %s158_s10 = scalar_lea.sflag [#allocation3], %s157_s28 }
  0x17   : > { %559 = dma.hbm_to_vmem [thread:$0]  (!%p557_p0), %s171_s9, 128, %s173_s8, %s158_s10  }
  0x18   : > { %p190_p3 = pnand %p546_p1, %p189_p2 }
  0x19   : > { %s833_s11 = sand.u32 (!%p190_p3), 1, %s719_s13  }
  0x1a   : > { %193 = sbr.rel (%p190_p3) target bundleno = 296 (0x128), region = 32  ;;  %s547_s18 = sshll.u32 (!%p190_p3), %s833_s11, 3 }
  0x1b   : > { %s196_s19 = scalar_lea.sflag (!%p190_p3), [#allocation3], %s833_s11  ;;  %s199_s21 = scalar_lea.vmem (!%p190_p3), [#allocation2], %s547_s18 }
  0x1f   : > { %706 = dma.done.wait (%p806_p8), %s196_s19, 128  }
  0x20   : > { %708 = vsyncadd (%p806_p8), %s196_s19, 4294967168  ;;  %v737_v0 = vmov 0   ;;  %v243_v1 = vld [vmem:[%s933_s2] sm:$0xf]  ;;  %v241_v2 = vld [vmem:[%s199_s21] sm:$0xff]  ;;  %vm252_vm0 = vcmask 1043456   ;;  %v244_v24 = vlaneseq  ;;  %s442_s7 = scalar_lea.hbm %s934_s3, %s727_s15 }
  0x21   : > { %616 = vset.pattern.permute.xlu0 %v737_v0  ;;  %247 = vst [vmem:[#allocation1] ss:$2 sm:$0xff] %v241_v2  ;;  %v738_v25 = vmov 839922192   ;;  %p232_p4 = scmp.lt.s32.totalorder %s727_s15, 1  ;;  %s229_s8 = scalar_lea.vmem [#allocation5], %s833_s11 }
  0x22   : > { %314 = vperm.xlu0 %616, %v243_v1   ;;  %v345_v26 = vunpack.c.l.s4 %v738_v25  ;;  %v854_v29 = vshrl.u32 %v244_v24, 7  ;;  %s444_s9 = sshll.u32 %s229_s8, 4  ;;  %s446_s10 = sshll.u32 %s442_s7, 4  ;;  %s445_s9 = int_to_ptr.vmem [resolvable:$true] %s444_s9  ;;  %s447_s10 = int_to_ptr.hbm [resolvable:$true] %s446_s10 }
  0x23   : > { %s233_s24 = scalar_select %p232_p4, %s727_s15, 1 }
  0x24   : > { %v346_v30 = vunpack.c.0.s8 %v345_v26  ;;  %s433_s18 = scalar_lea.sflag [#allocation4], %s833_s11  ;;  %s667_s19 = sshra.s32 %s447_s10, 4  ;;  %s668_s19 = int_to_ptr.hbm [resolvable:$true] %s667_s19 }
  0x25   : > { %s548_s28 = sshll.u32 %s233_s24, 1  ;;  %s669_s21 = scalar_lea.hbm %s668_s19, 1 }
  0x26   : > { %v347_v31 = vperm.slane %v854_v29, %v346_v30  ;;  %s238_s4 = scalar_lea.vmem %s932_s1, %s548_s28  ;;  %p670_p5 = scmp.ne.s32.totalorder %s668_s19, %s669_s21 }
  0x27   : > { %s673_s15 = scalar_lea.hbm %s934_s3, 2  ;;  %p674_p8 = scmp.lt.s32.totalorder %s668_s19, %s934_s3 }
  0x28   : > { %v249_v3 = vld.sshfl [vmem:[#allocation1 + $0x8] sm:$0xff pattern:$0x75316420]  ;;  %v248_v5 = vld.sshfl [vmem:[#allocation1] sm:$0xff pattern:$0x75316420]  ;;  %p671_p6 = pnand %p670_p5, %p810_p9  ;;  %p675_p10 = scmp.lt.s32.totalorder %s673_s15, %s669_s21 }
  0x29   : > { %v260_v4 = vsel %vm252_vm0, %v249_v3, -inf  ;;  %v253_v7 = vsel %vm252_vm0, %v248_v5, -inf  ;;  %v870_v3 = vld [vmem:[%s238_s4] sm:$0x3] }
  0x2a   : > { %v261_v6 = vrot.slane %v260_v4, 4  ;;  %v254_v8 = vrot.slane %v253_v7, 4  ;;  %p672_p7 = pneg %p671_p6  ;;  %p676_p13 = por %p675_p10, %p674_p8 }
  0x2c   : > { %v262_v9 = vmax.f32 %v260_v4, %v261_v6  ;;  %v255_v10 = vmax.f32 %v253_v7, %v254_v8  ;;  %v301_v8 = vperm.slane %v870_v3, 0  ;;  %p677_p0 = pnand %p676_p13, %p672_p7 }
  0x2e   : > { %v263_v11 = vrot.slane %v262_v9, 2  ;;  %v256_v12 = vrot.slane %v255_v10, 2  ;;  %vm303_vm10 = vcmp.eq.s32.totalorder %v854_v29, %v301_v8 }
  0x30   : > { %v264_v13 = vmax.f32 %v262_v9, %v263_v11  ;;  %v257_v14 = vmax.f32 %v255_v10, %v256_v12  ;;  %v302_v9 = vperm.slane %v870_v3, 1 }
  0x32   : > { %v265_v15 = vrot.slane %v264_v13, 1  ;;  %v258_v16 = vrot.slane %v257_v14, 1  ;;  %vm304_vm11 = vcmp.eq.s32.totalorder %v854_v29, %v302_v9 }
  0x34   : > { %v846_v17 = vmax.f32 %v264_v13, %v265_v15  ;;  %v848_v18 = vmax.f32 %v257_v14, %v258_v16 }
  0x36   : > { %v269_v19 = vrot.slane %v846_v17, 4  ;;  %vm391_vm12 = vcmp.ge.f32.partialorder %v846_v17, 0.5  ;;  %vm390_vm14 = vcmp.ge.f32.partialorder %v848_v18, 0.5 }
  0x38   : > { %v270_v20 = vsel %vm252_vm0, %v848_v18, %v269_v19 }
  0x39   : > { %v272_v21 = vsub.f32 %v241_v2, %v270_v20  ;;  %vm343_vm1 = vcmp.eq.f32.partialorder %v241_v2, %v270_v20 }
  0x3a   : > { %v348_v34 = vsel %vm343_vm1, %v347_v31, 4 }
  0x3b   : > { %v273_v22 = vmul.f32 1.442695, %v272_v21 }
  0x3d   : > { %617 = vpow2.f32 %v273_v22 }
  0x43   : > { %v618_v23 = vpop.eup %617 }
  0x44   : > { %276 = vst [vmem:[#allocation1] ss:$2 sm:$0xff] %v618_v23 }
  0x4b   : > { %v277_v27 = vld.sshfl [vmem:[#allocation1] sm:$0xff pattern:$0x75316420]  ;;  %v278_v28 = vld.sshfl [vmem:[#allocation1 + $0x8] sm:$0xff pattern:$0x75316420] }
  0x4c   : > { %305 = vst [vmem:[#allocation1] ss:$2 sm:$0xff] %v241_v2  ;;  %v281_v35 = vsel %vm252_vm0, %v277_v27, 0.0  ;;  %v288_v36 = vsel %vm252_vm0, %v278_v28, 0.0 }
  0x4d   : > { %v282_v37 = vrot.slane %v281_v35, 4  ;;  %v289_v38 = vrot.slane %v288_v36, 4 }
  0x4f   : > { %v283_v39 = vadd.f32 %v282_v37, %v281_v35  ;;  %v290_v40 = vadd.f32 %v289_v38, %v288_v36 }
  0x51   : > { %v284_v43 = vrot.slane %v283_v39, 2  ;;  %v291_v44 = vrot.slane %v290_v40, 2 }
  0x53   : > { %v857_v32 = vld.sshfl [vmem:[#allocation1] sm:$0xff pattern:$0x75316420]  ;;  %v859_v33 = vld.sshfl [vmem:[#allocation1 + $0x8] sm:$0xff pattern:$0x75316420]  ;;  %v285_v47 = vadd.f32 %v284_v43, %v283_v39  ;;  %v292_v48 = vadd.f32 %v291_v44, %v290_v40 }
  0x54   : > { %349 = vst [vmem:[#allocation1] ss:$2 sm:$0xff] %v348_v34 }
  0x55   : > { %v286_v51 = vrot.slane %v285_v47, 1  ;;  %v293_v52 = vrot.slane %v292_v48, 1 }
  0x57   : > { %v287_v53 = vadd.f32 %v286_v51, %v285_v47  ;;  %v294_v56 = vadd.f32 %v293_v52, %v292_v48 }
  0x59   : > { %619 = vlog2.f32 %v287_v53 }
  0x5a   : > { %621 = vlog2.f32 %v294_v56 }
  0x5b   : > { %v350_v41 = vld.sshfl [vmem:[#allocation1] sm:$0xff pattern:$0x75316420]  ;;  %v351_v42 = vld.sshfl [vmem:[#allocation1 + $0x8] sm:$0xff pattern:$0x75316420] }
  0x5c   : > { %v352_v45 = vsel %vm252_vm0, %v350_v41, 2147483647  ;;  %v362_v46 = vsel %vm252_vm0, %v351_v42, 2147483647 }
  0x5d   : > { %v353_v49 = vrot.slane %v352_v45, 4  ;;  %v363_v50 = vrot.slane %v362_v46, 4 }
  0x5f   : > { %vm354_vm2 = vcmp.lt.s32.totalorder %v352_v45, %v353_v49  ;;  %vm364_vm3 = vcmp.lt.s32.totalorder %v362_v46, %v363_v50  ;;  %v620_v59 = vpop.eup %619 }
  0x60   : > { %v355_v54 = vsel %vm354_vm2, %v352_v45, %v353_v49  ;;  %v365_v55 = vsel %vm364_vm3, %v362_v46, %v363_v50  ;;  %v622_v62 = vpop.eup %621  ;;  %v296_v1 = vmul.f32 0.6931472, %v620_v59  ;;  %vm339_vm2 = vcmask 1040384  }
  0x61   : > { %v356_v57 = vrot.slane %v355_v54, 2  ;;  %v366_v58 = vrot.slane %v365_v55, 2  ;;  %v298_v2 = vmul.f32 0.6931472, %v622_v62  ;;  %vm335_vm3 = vcmp.ne.s32.totalorder %v870_v3, 255 }
  0x62   : > { %v299_v4 = vadd.f32 %v296_v1, %v848_v18  ;;  %v403_v1 = vand.u32 127, %v244_v24 }
  0x63   : > { %vm357_vm4 = vcmp.lt.s32.totalorder %v355_v54, %v356_v57  ;;  %vm367_vm5 = vcmp.lt.s32.totalorder %v365_v55, %v366_v58  ;;  %v300_v5 = vadd.f32 %v298_v2, %v846_v17 }
  0x64   : > { %v358_v60 = vsel %vm357_vm4, %v355_v54, %v356_v57  ;;  %v368_v61 = vsel %vm367_vm5, %v365_v55, %v366_v58  ;;  %v310_v10 = vsub.f32 %v299_v4, %v857_v32  ;;  %v396_v40 = vsub.f32 %v299_v4, %v848_v18 }
  0x65   : > { %v359_v63 = vrot.slane %v358_v60, 1  ;;  %v369_v0 = vrot.slane %v368_v61, 1  ;;  %v311_v11 = vsub.f32 %v300_v5, %v859_v33  ;;  %v397_v41 = vsub.f32 %v300_v5, %v846_v17 }
  0x66   : > { %vm429_vm4 = vcmp.eq.s32.totalorder %v403_v1, 0 }
  0x67   : > { %vm360_vm6 = vcmp.lt.s32.totalorder %v358_v60, %v359_v63  ;;  %vm370_vm7 = vcmp.lt.s32.totalorder %v368_v61, %v369_v0 }
  0x68   : > { %v361_v6 = vsel %vm360_vm6, %v358_v60, %v359_v63  ;;  %v371_v7 = vsel %vm370_vm7, %v368_v61, %v369_v0 }
  0x69   : > { %vm372_vm8 = vcmp.eq.s32.totalorder %v854_v29, %v361_v6  ;;  %vm373_vm9 = vcmp.eq.s32.totalorder %v854_v29, %v371_v7  ;;  %vm393_vm13 = vcmp.ne.s32.totalorder %v371_v7, 255  ;;  %vm392_vm15 = vcmp.ne.s32.totalorder %v361_v6, 255 }
  0x6a   : > { %vm394_vm1 = vmand %vm390_vm14, %vm392_vm15 }
  0x94   : > { %v315_v12 = vpop.permute.xlu0 %314 }
  0x95   : > { %v317_v13 = vmul.f32 %v315_v12, %v310_v10  ;;  %v318_v14 = vmul.f32 %v315_v12, %v311_v11  ;;  %v374_v15 = vsel %vm372_vm8, %v315_v12, 0.0  ;;  %v375_v16 = vsel %vm373_vm9, %v315_v12, 0.0 }
  0x96   : > { %v376_v19 = vsel %vm252_vm0, %v374_v15, 0.0  ;;  %v383_v20 = vsel %vm252_vm0, %v375_v16, 0.0 }
  0x97   : > { %v319_v21 = vsel %vm303_vm10, %v317_v13, 0.0  ;;  %v320_v22 = vsel %vm304_vm11, %v318_v14, 0.0  ;;  %v377_v23 = vrot.slane %v376_v19, 4  ;;  %v384_v25 = vrot.slane %v383_v20, 4 }
  0x98   : > { %v321_v26 = vsel %vm252_vm0, %v319_v21, 0.0  ;;  %v328_v27 = vsel %vm252_vm0, %v320_v22, 0.0  ;;  %vm395_vm0 = vmand %vm391_vm12, %vm393_vm13 }
  0x99   : > { %v322_v28 = vrot.slane %v321_v26, 4  ;;  %v329_v30 = vrot.slane %v328_v27, 4  ;;  %v378_v31 = vadd.f32 %v377_v23, %v376_v19  ;;  %v385_v29 = vadd.f32 %v384_v25, %v383_v20 }
  0x9b   : > { %v323_v32 = vadd.f32 %v322_v28, %v321_v26  ;;  %v330_v33 = vadd.f32 %v329_v30, %v328_v27  ;;  %v379_v34 = vrot.slane %v378_v31, 2  ;;  %v386_v35 = vrot.slane %v385_v29, 2 }
  0x9d   : > { %v324_v36 = vrot.slane %v323_v32, 2  ;;  %v331_v37 = vrot.slane %v330_v33, 2  ;;  %v380_v38 = vadd.f32 %v379_v34, %v378_v31  ;;  %v387_v39 = vadd.f32 %v386_v35, %v385_v29 }
  0x9f   : > { %v325_v42 = vadd.f32 %v324_v36, %v323_v32  ;;  %v332_v43 = vadd.f32 %v331_v37, %v330_v33  ;;  %v381_v44 = vrot.slane %v380_v38, 1  ;;  %v388_v45 = vrot.slane %v387_v39, 1 }
  0xa1   : > { %v326_v46 = vrot.slane %v325_v42, 1  ;;  %v333_v47 = vrot.slane %v332_v43, 1  ;;  %v382_v48 = vadd.f32 %v381_v44, %v380_v38  ;;  %v389_v49 = vadd.f32 %v388_v45, %v387_v39 }
  0xa3   : > { %v399_v50 = vmul.f32 %v397_v41, %v389_v49  ;;  %v334_v51 = vadd.f32 %v333_v47, %v332_v43  ;;  %v398_v52 = vmul.f32 %v396_v40, %v382_v48  ;;  %v327_v54 = vadd.f32 %v326_v46, %v325_v42 }
  0xa5   : > { %v401_v53 = vsel %vm395_vm0, %v399_v50, 0.0  ;;  %v338_v17 = vrot.slane %v334_v51, 7  ;;  %v400_v56 = vsel %vm394_vm1, %v398_v52, 0.0 }
  0xa6   : > { %v413_v55 = vrot.slane %v401_v53, 7 }
  0xa7   : > { %v340_v18 = vsel %vm339_vm2, %v327_v54, %v338_v17 }
  0xa8   : > { %v342_v57 = vsel %vm335_vm3, %v340_v18, 0.0  ;;  %v414_v58 = vsel %vm339_vm2, %v400_v56, %v413_v55 }
  0xa9   : > { %v416_v59 = vadd.f32 %v414_v58, %v342_v57 }
  0xab   : > { %v418_v60 = vperm.slane %v416_v59, 0  ;;  %v419_v61 = vperm.slane %v416_v59, 1 }
  0xad   : > { %v424_v62 = vsel %vm339_vm2, %v418_v60, 0.0  ;;  %v425_v63 = vsel %vm339_vm2, %v419_v61, 0.0 }
  0xae   : > { %v426_v0 = vadd.f32 %v425_v63, %v424_v62 }
  0xb0   : > { %427 = vadd.xlane.f32.xlu0 %v426_v0 }
 0x123   : > { %v428_v2 = vpop.xlane.xlu0 %427 }
 0x124   : > { %v430_v3 = vsel %vm429_vm4, %v428_v2, 0.0 }
 0x125   : > { %431 = vst [vmem:[%s229_s8] sm:$0x1] %v430_v3 }
 0x126   : > { %680 = shalt.err (!%p677_p0)
}
 0x127   : > { %554 = dma.vmem_to_hbm [thread:$0]  (%p810_p9), %s445_s9, 16, %s447_s10, %s433_s18  }
 0x128 PF: > { %s458_s11 = sand.u32 1, %s715_s12   ;;  %p561_p1 = pnand %p542_p12, %p817_p11 }
 0x129   : > { %s459_s29 = scalar_lea.sflag [#allocation4], %s458_s11 }
 0x12a   : > { %p562_p2 = pneg %p561_p1 }
 0x12c   : > { %710 = dma.done.wait (%p562_p2), %s459_s29, 16  }
 0x12d   : > { %712 = vsyncadd (%p562_p2), %s459_s29, 4294967280  ;;  %s19_s17 = sadd.s32 1, %s735_s17   ;;  %s939_s12 = smov %s719_s13 }
 0x12e   : > { %p16_p3 = scmp.ge.s32.totalorder %s19_s17, 4   ;;  %s940_s13 = smov %s723_s14 }
 0x12f   : > { %s941_s14 = smov %s815_s26  ;;  %s942_s15 = smov %s731_s16 }
 0x130   : > { %s943_s16 = smov %s945_s20  ;;  %18 = sbr.rel (!%p16_p3) target bundleno = 6 (0x6), region = 80 }
 0x135   :  { %464 = vsyncpa [#allocation3], 1 }
 0x136   :  { %466 = vsyncpa [#allocation3 + $0x1], 1 }
 0x137   :  { %467 = vsyncpa [#allocation4], 1 }
 0x138   :  { %469 = vsyncpa [#allocation4 + $0x1], 1 }

</bundles_post_ra>
